<compile_context>
chip_gen: v6e
topology: v6e:2x2x1
jax: 0.10.0
libtpu: 0.0.40
codegen_flags: <defaults>
</compile_context>

<pallas_src>
import functools

import jax
import jax.numpy as jnp
import numpy as np
from jax.experimental import pallas as pl
from jax.experimental.pallas import tpu as pltpu

LANE = 128
SUB_I8 = 32            # int8 min sublane tile
MAX_BLOCK_ROWS = 1024  # (1024,128) f32 ~ 0.5 MiB/stream; safe on v5e/v6e/v7x VMEM


def _dropedge_kernel(inv_keep_rate, keep_threshold, num_edges,
                     vals_ref, bits_ref, newvals_ref, mask_ref):
    block_rows = vals_ref.shape[0]
    # keep iff bits < round(keep_rate * 2**32): probability == keep_rate,
    # same distribution as torch's (rand + keepRate).floor().bool().
    keep = bits_ref[...] < jnp.uint32(keep_threshold)
    # Validity computed in-kernel (E is a static Python int) -> no extra
    # HBM input stream for a padding mask.
    row_ids = jax.lax.broadcasted_iota(jnp.int32, vals_ref.shape, 0)
    lane_ids = jax.lax.broadcasted_iota(jnp.int32, vals_ref.shape, 1)
    gidx = (pl.program_id(0) * block_rows + row_ids) * LANE + lane_ids
    keep = jnp.logical_and(keep, gidx < num_edges)
    mask_ref[...] = keep.astype(jnp.int8)
    newvals_ref[...] = jnp.where(keep, vals_ref[...] * inv_keep_rate,
                                 jnp.float32(0.0))


def sp_adj_drop_edge(idxs, vals, adj_shape, keep_rate, seed=0):
    """JAX/Pallas equivalent of SpAdjDropEdge.forward.

    Returns (new_idxs, new_vals, num_kept, keep): padded sparse COO where
    entries [0:num_kept] are the surviving edges (values already divided by
    keep_rate, original order preserved) and the remainder is zero padding.
    """
    E = vals.shape[0]
    if keep_rate == 1.0:                        # same early-exit as the module
        return (idxs, vals, jnp.asarray(E, jnp.int32),
                jnp.ones((E,), dtype=bool))

    rows = pl.cdiv(E, LANE)
    rows32 = pl.cdiv(rows, SUB_I8) * SUB_I8     # int8 mask needs 32-row tiles
    block_rows = min(MAX_BLOCK_ROWS, rows32)
    rows_pad = pl.cdiv(rows32, block_rows) * block_rows
    E_pad = rows_pad * LANE

    vals2d = jnp.pad(vals.astype(jnp.float32),
                     (0, E_pad - E)).reshape(rows_pad, LANE)
    # TODO(synk): generating bits in-kernel with pltpu.prng_seed/prng_random_bits
    # would save this input stream, but that primitive has no lowering outside
    # real Mosaic TPU compilation, so bits come from jax.random for portability.
    bits2d = jax.random.bits(jax.random.PRNGKey(seed), (rows_pad, LANE),
                             dtype=jnp.uint32)

    keep_threshold = min(int(round(float(keep_rate) * (1 << 32))),
                         (1 << 32) - 1)
    kernel = functools.partial(_dropedge_kernel, float(1.0 / keep_rate),
                               keep_threshold, E)

    newvals2d, mask2d = pl.pallas_call(
        kernel,
        out_shape=(jax.ShapeDtypeStruct((rows_pad, LANE), jnp.float32),
                   jax.ShapeDtypeStruct((rows_pad, LANE), jnp.int8)),
        grid_spec=pltpu.PrefetchScalarGridSpec(
            num_scalar_prefetch=0,
            grid=(rows_pad // block_rows,),
            in_specs=[pl.BlockSpec((block_rows, LANE), lambda i: (i, 0)),
                      pl.BlockSpec((block_rows, LANE), lambda i: (i, 0))],
            out_specs=[pl.BlockSpec((block_rows, LANE), lambda i: (i, 0)),
                       pl.BlockSpec((block_rows, LANE), lambda i: (i, 0))]),
        compiler_params=pltpu.CompilerParams(
            dimension_semantics=("parallel",)),
    )(vals2d, bits2d)

    keep = mask2d.reshape(-1)[:E].astype(bool)
    scaled = newvals2d.reshape(-1)[:E]
    num_kept = keep.sum().astype(jnp.int32)

    # O(E) cumsum + scatter compaction (kept edges packed to the front in
    # original order; dropped edges routed to scratch slot E and sliced away).
    # TODO(synk): torch returns a dynamically-sized sparse tensor; JAX needs
    # static shapes, so the result is padded to E entries.
    dst = jnp.cumsum(keep.astype(jnp.int32)) - 1
    safe_dst = jnp.where(keep, dst, E)
    new_vals = jnp.zeros((E + 1,), jnp.float32).at[safe_dst].set(scaled)[:E]
    new_idxs = jnp.zeros((2, E + 1), idxs.dtype).at[:, safe_dst].set(idxs)[:, :E]
    return new_idxs, new_vals, num_kept, keep


if __name__ == "__main__":
    key = jax.random.PRNGKey(0)
    N = 64        # nodes in the adjacency (adj is N x N sparse)
    E = 1000      # number of nonzero edges
    k_idx, k_val = jax.random.split(key)
    idxs = jax.random.randint(k_idx, (2, E), 0, N, dtype=jnp.int32)
    vals = jax.random.uniform(k_val, (E,), jnp.float32, minval=0.1, maxval=1.0)
    keep_rate = 0.7

    new_idxs, new_vals, num_kept, keep = sp_adj_drop_edge(
        idxs, vals, (N, N), keep_rate, seed=42)
    jax.block_until_ready((new_idxs, new_vals, num_kept, keep))

    keep_np = np.asarray(keep)
    nk = int(num_kept)
    assert nk == int(keep_np.sum()) and 0 <= nk <= E

    # surviving edges match the reference vals[mask] / keepRate, idxs[:, mask]
    ref_vals = np.asarray(vals)[keep_np] / np.float32(keep_rate)
    ref_idxs = np.asarray(idxs)[:, keep_np]
    np.testing.assert_allclose(np.asarray(new_vals)[:nk], ref_vals,
                               rtol=1e-5, atol=1e-7)
    assert np.array_equal(np.asarray(new_idxs)[:, :nk], ref_idxs)
    # tail is zero padding
    assert np.all(np.asarray(new_vals)[nk:] == 0.0)
    assert np.all(np.asarray(new_idxs)[:, nk:] == 0)

    # keepRate == 1.0 early-exit path (module returns adj unchanged)
    i2, v2, n2, _ = sp_adj_drop_edge(idxs, vals, (N, N), 1.0, seed=1)
    assert int(n2) == E and np.array_equal(np.asarray(v2), np.asarray(vals))

    print("KERNEL_OK")
</pallas_src>

<mosaic_0001>
module attributes {stable_mosaic.version = 11 : i64} {
  func.func @_dropedge_kernel(%arg0: i32, %arg1: memref<32x128xf32, #tpu.memory_space<vmem>>, %arg2: memref<32x128xi32, #tpu.memory_space<vmem>>, %arg3: memref<32x128xf32, #tpu.memory_space<vmem>>, %arg4: memref<32x128xi8, #tpu.memory_space<vmem>>) attributes {dimension_semantics = [#tpu.dimension_semantics<parallel>], iteration_bounds = array<i64: 1>, scalar_prefetch = 0 : i64, scratch_operands = 0 : i64, tpu.core_type = #tpu.core_type<tc>, window_params = [{transform_indices = @transform_0, window_bounds = array<i64: 32, 128>}, {transform_indices = @transform_1, window_bounds = array<i64: 32, 128>}, {transform_indices = @transform_2, window_bounds = array<i64: 32, 128>}, {transform_indices = @transform_3, window_bounds = array<i64: 32, 128>}]} {
    %c0 = arith.constant 0 : index
    %c0_0 = arith.constant 0 : index
    %0 = vector.load %arg2[%c0, %c0_0] : memref<32x128xi32, #tpu.memory_space<vmem>>, vector<32x128xi32>
    %c-1288490189_i32 = arith.constant -1288490189 : i32
    %1 = vector.broadcast %c-1288490189_i32 : i32 to vector<32x128xi32>
    %2 = arith.cmpi ult, %0, %1 : vector<32x128xi32>
    %3 = tpu.iota {dimensions = array<i32: 0>} : vector<32x128xi32>
    %4 = tpu.iota {dimensions = array<i32: 1>} : vector<32x128xi32>
    %c32_i32 = arith.constant 32 : i32
    %5 = arith.muli %arg0, %c32_i32 : i32
    %6 = vector.broadcast %5 : i32 to vector<32x128xi32>
    %7 = arith.addi %6, %3 : vector<32x128xi32>
    %c128_i32 = arith.constant 128 : i32
    %8 = vector.broadcast %c128_i32 : i32 to vector<32x128xi32>
    %9 = arith.muli %7, %8 : vector<32x128xi32>
    %10 = arith.addi %9, %4 : vector<32x128xi32>
    %c1000_i32 = arith.constant 1000 : i32
    %11 = vector.broadcast %c1000_i32 : i32 to vector<32x128xi32>
    %12 = arith.cmpi slt, %10, %11 : vector<32x128xi32>
    %13 = arith.andi %2, %12 : vector<32x128xi1>
    %14 = arith.extui %13 : vector<32x128xi1> to vector<32x128xi8>
    %c0_1 = arith.constant 0 : index
    %c0_2 = arith.constant 0 : index
    %15 = vector.load %arg4[%c0_1, %c0_2] : memref<32x128xi8, #tpu.memory_space<vmem>>, vector<32x128xi8>
    tpu.vector_store %arg4[%c0_1, %c0_2], %14 {strides = array<i32>} : memref<32x128xi8, #tpu.memory_space<vmem>>, vector<32x128xi8>,
    %c0_3 = arith.constant 0 : index
    %c0_4 = arith.constant 0 : index
    %16 = vector.load %arg1[%c0_3, %c0_4] : memref<32x128xf32, #tpu.memory_space<vmem>>, vector<32x128xf32>
    %cst = arith.constant 1.42857146 : f32
    %17 = vector.broadcast %cst : f32 to vector<32x128xf32>
    %18 = arith.mulf %16, %17 : vector<32x128xf32>
    %cst_5 = arith.constant 0.000000e+00 : f32
    %19 = vector.broadcast %cst_5 : f32 to vector<32x128xf32>
    %20 = arith.select %13, %18, %19 : vector<32x128xi1>, vector<32x128xf32>
    %c0_6 = arith.constant 0 : index
    %c0_7 = arith.constant 0 : index
    %21 = vector.load %arg3[%c0_6, %c0_7] : memref<32x128xf32, #tpu.memory_space<vmem>>, vector<32x128xf32>
    tpu.vector_store %arg3[%c0_6, %c0_7], %20 {strides = array<i32>} : memref<32x128xf32, #tpu.memory_space<vmem>>, vector<32x128xf32>,
    return
  }
  func.func @transform_0(%arg0: i32) -> (i32, i32) {
    %c0_i32 = arith.constant 0 : i32
    %c0_i32_0 = arith.constant 0 : i32
    return %arg0, %c0_i32 : i32, i32
  }
  func.func @transform_1(%arg0: i32) -> (i32, i32) {
    %c0_i32 = arith.constant 0 : i32
    %c0_i32_0 = arith.constant 0 : i32
    return %arg0, %c0_i32 : i32, i32
  }
  func.func @transform_2(%arg0: i32) -> (i32, i32) {
    %c0_i32 = arith.constant 0 : i32
    %c0_i32_0 = arith.constant 0 : i32
    return %arg0, %c0_i32 : i32, i32
  }
  func.func @transform_3(%arg0: i32) -> (i32, i32) {
    %c0_i32 = arith.constant 0 : i32
    %c0_i32_0 = arith.constant 0 : i32
    return %arg0, %c0_i32 : i32, i32
  }
}

</mosaic_0001>

<bundles_post_ra>
// kernel: tpu_custom_call.1
= control target key start
LH: loop header
LB: loop body
LE: loop exit
PB: predicated region body
PF: predicated region fallthrough
CT: control target
= control target key end

     0   :  { %9 = vsyncpa [#allocation3], 0  ;;  %s308_s0 = inlined_call_operand.hbm [shape: f32[32,128], index: 0, kind: input, shape index: {}]   ;;  %s309_s1 = inlined_call_operand.hbm [shape: u32[32,128], index: 1, kind: input, shape index: {}]   ;;  %s310_s2 = inlined_call_operand.hbm [shape: f32[32,128], index: 2, kind: output, shape index: {0}]   ;;  %s311_s3 = inlined_call_operand.hbm [shape: s8[32,128], index: 3, kind: output, shape index: {1}]  }
   0x1   :  { %10 = vsyncpa [#allocation6], 0 }
   0x2   :  { %11 = vsyncpa [#allocation4], 0 }
   0x3   :  { %12 = vsyncpa [#allocation9], 0  ;;  %s230_s12 = smov [#allocation2]  }
   0x4   :  { %s18_s13 = sshll.u32 %s230_s12, 4  ;;  %s19_s13 = int_to_ptr.vmem [resolvable:$true] %s18_s13 }
   0x5   :  { %s150_s14 = scalar_lea.vmem %s19_s13, 512  ;;  %p155_p1 = scmp.lt.s32.totalorder %s19_s13, %s19_s13 }
   0x6   :  { %p151_p0 = scmp.ne.s32.totalorder %s19_s13, %s150_s14  ;;  %p156_p2 = scmp.lt.s32.totalorder %s150_s14, %s150_s14 }
   0x8   :  { %p157_p3 = por %p156_p2, %p155_p1 }
   0xa   :  { %p158_p4 = pnand %p157_p3, %p151_p0 }
   0xc   :  { %161 = shalt.err (!%p158_p4)
}
   0xd   :  { %s231_s15 = smov 128   ;;  %s232_s16 = smov 8  }
   0xe   :  { %24 = dma.hbm_to_vmem [thread:$0]  %s308_s0, 512, %s19_s13, [#allocation3], %s231_s15, %s231_s15, %s232_s16  }
   0xf   :  { %s233_s19 = smov [#allocation5]  }
  0x10   :  { %s30_s20 = sshll.u32 %s233_s19, 4  ;;  %s31_s20 = int_to_ptr.vmem [resolvable:$true] %s30_s20 }
  0x11   :  { %s170_s21 = scalar_lea.vmem %s31_s20, 512  ;;  %p175_p6 = scmp.lt.s32.totalorder %s31_s20, %s31_s20 }
  0x12   :  { %p171_p5 = scmp.ne.s32.totalorder %s31_s20, %s170_s21  ;;  %p176_p7 = scmp.lt.s32.totalorder %s170_s21, %s170_s21 }
  0x14   :  { %p177_p8 = por %p176_p7, %p175_p6 }
  0x16   :  { %p178_p9 = pnand %p177_p8, %p171_p5 }
  0x18   :  { %181 = shalt.err (!%p178_p9)
}
  0x19   :  { %36 = dma.hbm_to_vmem [thread:$0]  %s309_s1, 512, %s31_s20, [#allocation6], %s231_s15, %s231_s15, %s232_s16  }
  0x1a   :  { %222 = dma.done.wait [#allocation3], 512  }
  0x1b   :  { %223 = vsyncadd [#allocation3], 4294966784 }
  0x1c   :  { %224 = dma.done.wait [#allocation6], 512  }
  0x1d   :  { %225 = vsyncadd [#allocation6], 4294966784  ;;  %v53_v0 = vlaneseq  ;;  %v45_v10 = vld [vmem:[#allocation5] sm:$0xff]  ;;  %v46_v11 = vld [vmem:[#allocation5 + $0x8] sm:$0xff]  ;;  %s234_s0 = smov [#allocation7]   ;;  %s235_s24 = smov [#allocation8]  }
  0x1e   :  { %v47_v12 = vld [vmem:[#allocation5 + $0x10] sm:$0xff]  ;;  %s269_s1 = sshll.u32 %s234_s0, 4  ;;  %v48_v14 = vld [vmem:[#allocation5 + $0x18] sm:$0xff]  ;;  %vm49_vm0 = vcmp.lt.u32.totalorder %v45_v10, 3006477107  ;;  %v87_v17 = vld [vmem:[#allocation2] sm:$0xff]  ;;  %s109_s1 = int_to_ptr.vmem [resolvable:$true] %s269_s1 }
  0x1f   :  { %v54_v1 = vshrl.u32 %v53_v0, 7  ;;  %v59_v2 = vand.u32 127, %v53_v0  ;;  %vm50_vm1 = vcmp.lt.u32.totalorder %v46_v11, 3006477107  ;;  %vm51_vm2 = vcmp.lt.u32.totalorder %v47_v12, 3006477107  ;;  %p187_p11 = scmp.lt.s32.totalorder %s109_s1, %s109_s1 }
  0x20   :  { %vm52_vm3 = vcmp.lt.u32.totalorder %v48_v14, 3006477107  ;;  %v88_v19 = vld [vmem:[#allocation2 + $0x8] sm:$0xff]  ;;  %v91_v21 = vmul.f32 1.4285715, %v87_v17  ;;  %v89_v24 = vld [vmem:[#allocation2 + $0x10] sm:$0xff] }
  0x21   :  { %v55_v3 = vadd.s32 8, %v54_v1  ;;  %v56_v4 = vadd.s32 16, %v54_v1  ;;  %v57_v5 = vadd.s32 24, %v54_v1  ;;  %v66_v6 = vmul.u32 128, %v54_v1  ;;  %v90_v25 = vld [vmem:[#allocation2 + $0x18] sm:$0xff]  ;;  %s121_s25 = sshll.u32 %s235_s24, 4  ;;  %s122_s25 = int_to_ptr.vmem [resolvable:$true] %s121_s25 }
  0x22   :  { %v92_v22 = vmul.f32 1.4285715, %v88_v19  ;;  %v93_v29 = vmul.f32 1.4285715, %v89_v24  ;;  %v94_v30 = vmul.f32 1.4285715, %v90_v25 }
  0x23   :  { %v67_v7 = vmul.u32 128, %v55_v3  ;;  %v68_v8 = vmul.u32 128, %v56_v4  ;;  %v70_v9 = vadd.s32 %v66_v6, %v59_v2  ;;  %s182_s26 = scalar_lea.vmem %s109_s1, 512 }
  0x24   :  { %v69_v13 = vmul.u32 128, %v57_v5  ;;  %p183_p10 = scmp.ne.s32.totalorder %s109_s1, %s182_s26  ;;  %p188_p12 = scmp.lt.s32.totalorder %s182_s26, %s182_s26 }
  0x25   :  { %v71_v15 = vadd.s32 %v67_v7, %v59_v2  ;;  %v72_v16 = vadd.s32 %v68_v8, %v59_v2  ;;  %vm74_vm4 = vcmp.lt.s32.totalorder %v70_v9, 1000 }
  0x26   :  { %v73_v18 = vadd.s32 %v69_v13, %v59_v2  ;;  %vm271_vm7 = vmand %vm49_vm0, %vm74_vm4  ;;  %p189_p13 = por %p188_p12, %p187_p11 }
  0x27   :  { %vm75_vm5 = vcmp.lt.s32.totalorder %v71_v15, 1000  ;;  %vm76_vm6 = vcmp.lt.s32.totalorder %v72_v16, 1000  ;;  %v95_v27 = vsel %vm271_vm7, %v91_v21, 0.0 }
  0x28   :  { %vm77_vm8 = vcmp.lt.s32.totalorder %v73_v18, 1000  ;;  %vm276_vm9 = vmand %vm50_vm1, %vm75_vm5  ;;  %99 = vst [vmem:[#allocation7] sm:$0xff] %v95_v27  ;;  %p190_p0 = pnand %p189_p13, %p183_p10 }
  0x29   :  { %vm281_vm10 = vmand %vm51_vm2, %vm76_vm6  ;;  %v96_v28 = vsel %vm276_vm9, %v92_v22, 0.0 }
  0x2a   :  { %vm81_vm11 = vmand %vm52_vm3, %vm77_vm8  ;;  %100 = vst [vmem:[#allocation7 + $0x8] sm:$0xff] %v96_v28  ;;  %v97_v31 = vsel %vm281_vm10, %v93_v29, 0.0 }
  0x2b   :  { %vm82_vm12 = vmpackc.low %vm276_vm9, %vm271_vm7  ;;  %v98_v32 = vsel %vm81_vm11, %v94_v30, 0.0  ;;  %101 = vst [vmem:[#allocation7 + $0x10] sm:$0xff] %v97_v31 }
  0x2c   :  { %vm83_vm13 = vmpackc.low %vm81_vm11, %vm281_vm10  ;;  %102 = vst [vmem:[#allocation7 + $0x18] sm:$0xff] %v98_v32 }
  0x2d   :  { %vm84_vm14 = vmpackc.even %vm83_vm13, %vm82_vm12 }
  0x2e   :  { %193 = shalt.err (!%p190_p0)
}
  0x2f   :  { %114 = dma.vmem_to_hbm [thread:$0]  %s109_s1, 512, %s310_s2, [#allocation4], %s231_s15, %s231_s15, %s232_s16   ;;  %v236_v33 = vmov 0  }
  0x30   :  { %v85_v34 = vsel %vm84_vm14, 16843009, %v236_v33  ;;  %s202_s29 = scalar_lea.vmem %s122_s25, 128  ;;  %p207_p2 = scmp.lt.s32.totalorder %s122_s25, %s122_s25 }
  0x31   :  { %86 = vst [vmem:[#allocation8] sm:$0xff] %v85_v34  ;;  %p203_p1 = scmp.ne.s32.totalorder %s122_s25, %s202_s29  ;;  %p208_p3 = scmp.lt.s32.totalorder %s202_s29, %s202_s29 }
  0x33   :  { %p209_p4 = por %p208_p3, %p207_p2 }
  0x35   :  { %p210_p5 = pnand %p209_p4, %p203_p1 }
  0x37   :  { %213 = shalt.err (!%p210_p5)
}
  0x38   :  { %124 = dma.vmem_to_hbm [thread:$0]  %s122_s25, 128, %s311_s3, [#allocation9]  }
  0x39   :  { %226 = dma.done.wait [#allocation4], 512  }
  0x3a   :  { %227 = vsyncadd [#allocation4], 4294966784 }
  0x3b   :  { %228 = dma.done.wait [#allocation9], 128  }
  0x3c   :  { %229 = vsyncadd [#allocation9], 4294967168 }
  0x3d   :  { %131 = vsyncpa [#allocation3], 1 }
  0x3e   :  { %132 = vsyncpa [#allocation6], 1 }
  0x3f   :  { %133 = vsyncpa [#allocation4], 1 }
  0x40   :  { %134 = vsyncpa [#allocation9], 1 }

</bundles_post_ra>
